<compile_context>
chip_gen: v6e
topology: v6e:2x2x1
jax: 0.10.0
libtpu: 0.0.40
codegen_flags: <defaults>
</compile_context>

<pallas_src>
import jax
import jax.numpy as jnp
from jax.experimental import pallas as pl
from jax.experimental.pallas import tpu as pltpu

_LANE = 128
_SUBLANE = 8


def _round_up(x, m):
    return ((x + m - 1) // m) * m


def _mlp_kernel(x_ref, lw1_ref, w2t_ref, b2_ref, w3t_ref, b3_ref, o_ref):
    # x_ref: (TM, Ep) bf16 rows for this grid step; weight refs use constant
    # index maps -> VMEM resident across the whole grid (DMA'd once).
    x = x_ref[...]
    # h1 = relu(x @ lw1)            -> (TM, H1p); f32 accumulate, bf16 for next MXU op
    h1 = jnp.dot(x, lw1_ref[...], preferred_element_type=jnp.float32)
    h1 = jnp.maximum(h1, 0.0).astype(jnp.bfloat16)
    # h2 = relu(h1 @ W2^T + b2)     -> (TM, H2p)
    h2 = jnp.dot(h1, w2t_ref[...], preferred_element_type=jnp.float32) + b2_ref[...]
    h2 = jnp.maximum(h2, 0.0).astype(jnp.bfloat16)
    # out = h2 @ W3^T + b3          -> (TM, Op); Op is a multiple of 128 -> unmasked vst
    out = jnp.dot(h2, w3t_ref[...], preferred_element_type=jnp.float32) + b3_ref[...]
    o_ref[...] = out.astype(o_ref.dtype)


def _fused_mlp_rows(x2d, lw1, w2, b2, w3, b3, *, block_rows=256):
    """x2d: (R, E) f32 rows. Returns (R, O) f32."""
    R, E = x2d.shape
    H1 = lw1.shape[1]
    H2 = w2.shape[0]
    O = w3.shape[0]

    # Lane-pad every feature dim to a multiple of 128 (zero padding is exact:
    # padded lanes contribute 0 through the matmuls / relu and are sliced off).
    Ep = _round_up(E, _LANE)
    H1p = _round_up(H1, _LANE)
    H2p = _round_up(H2, _LANE)
    Op = _round_up(O, _LANE)

    # Row tile: multiple of 8, no bigger than the (padded) row count.
    tm = min(block_rows, _round_up(max(R, _SUBLANE), _SUBLANE))
    Rp = _round_up(R, tm)
    grid = Rp // tm

    bf16 = jnp.bfloat16
    f32 = jnp.float32

    # Glue: pre-transpose Linear weights, zero-pad, cast MXU operands to bf16.
    xp = jnp.zeros((Rp, Ep), bf16).at[:R, :E].set(x2d.astype(bf16))
    lw1p = jnp.zeros((Ep, H1p), bf16).at[:E, :H1].set(lw1.astype(bf16))
    w2tp = jnp.zeros((H1p, H2p), bf16).at[:H1, :H2].set(jnp.transpose(w2).astype(bf16))
    w3tp = jnp.zeros((H2p, Op), bf16).at[:H2, :O].set(jnp.transpose(w3).astype(bf16))
    b2p = jnp.zeros((1, H2p), f32).at[:, :H2].set(b2.reshape(1, H2).astype(f32))
    b3p = jnp.zeros((1, Op), f32).at[:, :O].set(b3.reshape(1, O).astype(f32))

    # Advisory cost hint for XLA's scheduler around the custom call.
    flops = 2 * Rp * (Ep * H1p + H1p * H2p + H2p * Op)
    bytes_accessed = (
        xp.size * 2 + lw1p.size * 2 + w2tp.size * 2 + w3tp.size * 2
        + b2p.size * 4 + b3p.size * 4 + Rp * Op * 4
    )

    out = pl.pallas_call(
        _mlp_kernel,
        out_shape=jax.ShapeDtypeStruct((Rp, Op), f32),
        grid_spec=pltpu.PrefetchScalarGridSpec(
            num_scalar_prefetch=0,
            grid=(grid,),
            in_specs=[
                pl.BlockSpec((tm, Ep), lambda i: (i, 0)),     # x rows: one tile per step
                pl.BlockSpec((Ep, H1p), lambda i: (0, 0)),    # lw1         (VMEM resident)
                pl.BlockSpec((H1p, H2p), lambda i: (0, 0)),   # W2^T        (VMEM resident)
                pl.BlockSpec((1, H2p), lambda i: (0, 0)),     # b2
                pl.BlockSpec((H2p, Op), lambda i: (0, 0)),    # W3^T        (VMEM resident)
                pl.BlockSpec((1, Op), lambda i: (0, 0)),      # b3
            ],
            out_specs=pl.BlockSpec((tm, Op), lambda i: (i, 0)),
        ),
        compiler_params=pltpu.CompilerParams(
            dimension_semantics=("parallel",),   # shards row tiles across TCs on v7x
        ),
        cost_estimate=pl.CostEstimate(
            flops=flops, transcendentals=0, bytes_accessed=bytes_accessed
        ),
    )(xp, lw1p, w2tp, b2p, w3tp, b3p)

    return out[:R, :O]


def siamese_forward(input1, input2, input3, params, *, block_rows=256):
    """Inputs: three (B, S, E) arrays. Returns three (B, S, output_dim) arrays."""
    lw1, w2, b2, w3, b3 = params
    B, S, E = input1.shape
    O = w3.shape[0]

    # Fuse the three branches into ONE pallas_call: stack along batch, then
    # flatten (branch, B, S) into a single row axis.
    x = jnp.concatenate([input1, input2, input3], axis=0)       # (3B, S, E)
    x2d = x.reshape(3 * B * S, E)
    out2d = _fused_mlp_rows(x2d, lw1, w2, b2, w3, b3, block_rows=block_rows)
    out = out2d.reshape(3, B, S, O)
    return out[0], out[1], out[2]


def _reference_once(x, lw1, w2, b2, w3, b3):
    """Pure-JAX reference with the SAME bf16-operand / f32-accumulate numerics
    as the kernel (so the correctness check is apples-to-apples)."""
    f32 = jnp.float32
    xb = x.astype(jnp.bfloat16).astype(f32)
    lw1b = lw1.astype(jnp.bfloat16).astype(f32)
    w2b = w2.astype(jnp.bfloat16).astype(f32)
    w3b = w3.astype(jnp.bfloat16).astype(f32)
    h1 = jnp.maximum(jnp.einsum("bse,eh->bsh", xb, lw1b), 0.0)
    h1 = h1.astype(jnp.bfloat16).astype(f32)
    h2 = jnp.maximum(jnp.einsum("bsh,oh->bso", h1, w2b) + b2, 0.0)
    h2 = h2.astype(jnp.bfloat16).astype(f32)
    return jnp.einsum("bsh,oh->bso", h2, w3b) + b3


if __name__ == "__main__":
    # Small shapes consistent with the module's forward.
    B, S = 2, 8
    embed_dim, hidden_dim1, hidden_dim2, output_dim = 32, 64, 32, 16

    key = jax.random.PRNGKey(0)
    k_lw1, k_w2, k_b2, k_w3, k_b3, k1, k2, k3 = jax.random.split(key, 8)

    # Deterministic synthetic parameters (shapes follow __init__):
    lw1 = jax.random.normal(k_lw1, (embed_dim, hidden_dim1), jnp.float32)
    w2 = jax.random.normal(k_w2, (hidden_dim2, hidden_dim1), jnp.float32) * 0.1
    b2 = jax.random.normal(k_b2, (hidden_dim2,), jnp.float32) * 0.1
    w3 = jax.random.normal(k_w3, (output_dim, hidden_dim2), jnp.float32) * 0.1
    b3 = jax.random.normal(k_b3, (output_dim,), jnp.float32) * 0.1
    params = (lw1, w2, b2, w3, b3)

    input1 = jax.random.normal(k1, (B, S, embed_dim), jnp.float32)
    input2 = jax.random.normal(k2, (B, S, embed_dim), jnp.float32)
    input3 = jax.random.normal(k3, (B, S, embed_dim), jnp.float32)

    out1, out2, out3 = siamese_forward(input1, input2, input3, params)
    jax.block_until_ready((out1, out2, out3))

    # Correctness check vs. precision-matched pure-JAX reference.
    ref1 = _reference_once(input1, *params)
    ref2 = _reference_once(input2, *params)
    ref3 = _reference_once(input3, *params)
    assert out1.shape == (B, S, output_dim)
    assert out2.shape == (B, S, output_dim)
    assert out3.shape == (B, S, output_dim)
    assert jnp.allclose(out1, ref1, atol=2e-2, rtol=2e-2)
    assert jnp.allclose(out2, ref2, atol=2e-2, rtol=2e-2)
    assert jnp.allclose(out3, ref3, atol=2e-2, rtol=2e-2)

    print("KERNEL_OK")
</pallas_src>

<mosaic_0001>
module attributes {stable_mosaic.version = 11 : i64} {
  func.func @_mlp_kernel(%arg0: i32, %arg1: memref<48x128xbf16, #tpu.memory_space<vmem>>, %arg2: memref<128x128xbf16, #tpu.memory_space<vmem>>, %arg3: memref<128x128xbf16, #tpu.memory_space<vmem>>, %arg4: memref<1x128xf32, #tpu.memory_space<vmem>>, %arg5: memref<128x128xbf16, #tpu.memory_space<vmem>>, %arg6: memref<1x128xf32, #tpu.memory_space<vmem>>, %arg7: memref<48x128xf32, #tpu.memory_space<vmem>>) attributes {dimension_semantics = [#tpu.dimension_semantics<parallel>], iteration_bounds = array<i64: 1>, scalar_prefetch = 0 : i64, scratch_operands = 0 : i64, tpu.core_type = #tpu.core_type<tc>, window_params = [{transform_indices = @transform_0, window_bounds = array<i64: 48, 128>}, {pipeline_mode = #tpu.pipeline_mode<synchronous>, transform_indices = @transform_1, window_bounds = array<i64: 128, 128>}, {pipeline_mode = #tpu.pipeline_mode<synchronous>, transform_indices = @transform_2, window_bounds = array<i64: 128, 128>}, {pipeline_mode = #tpu.pipeline_mode<synchronous>, transform_indices = @transform_3, window_bounds = array<i64: 1, 128>}, {pipeline_mode = #tpu.pipeline_mode<synchronous>, transform_indices = @transform_4, window_bounds = array<i64: 128, 128>}, {pipeline_mode = #tpu.pipeline_mode<synchronous>, transform_indices = @transform_5, window_bounds = array<i64: 1, 128>}, {transform_indices = @transform_6, window_bounds = array<i64: 48, 128>}]} {
    %c0 = arith.constant 0 : index
    %c0_0 = arith.constant 0 : index
    %0 = vector.load %arg1[%c0, %c0_0] : memref<48x128xbf16, #tpu.memory_space<vmem>>, vector<48x128xbf16>
    %c0_1 = arith.constant 0 : index
    %c0_2 = arith.constant 0 : index
    %1 = vector.load %arg2[%c0_1, %c0_2] : memref<128x128xbf16, #tpu.memory_space<vmem>>, vector<128x128xbf16>
    %cst = arith.constant dense<0.000000e+00> : vector<48x128xf32>
    %2 = tpu.matmul %0, %1, %cst {dimension_numbers = #tpu.dot_dimension_numbers<[1], [0], [0], [1], [0, 0, 1, 1], [], []>} : vector<48x128xbf16>, vector<128x128xbf16>, vector<48x128xf32> -> vector<48x128xf32>
    %cst_3 = arith.constant 0.000000e+00 : f32
    %3 = vector.broadcast %cst_3 : f32 to vector<48x128xf32>
    %4 = arith.maximumf %2, %3 : vector<48x128xf32>
    %5 = arith.truncf %4 : vector<48x128xf32> to vector<48x128xbf16>
    %c0_4 = arith.constant 0 : index
    %c0_5 = arith.constant 0 : index
    %6 = vector.load %arg3[%c0_4, %c0_5] : memref<128x128xbf16, #tpu.memory_space<vmem>>, vector<128x128xbf16>
    %cst_6 = arith.constant dense<0.000000e+00> : vector<48x128xf32>
    %7 = tpu.matmul %5, %6, %cst_6 {dimension_numbers = #tpu.dot_dimension_numbers<[1], [0], [0], [1], [0, 0, 1, 1], [], []>} : vector<48x128xbf16>, vector<128x128xbf16>, vector<48x128xf32> -> vector<48x128xf32>
    %c0_7 = arith.constant 0 : index
    %c0_8 = arith.constant 0 : index
    %8 = vector.load %arg4[%c0_7, %c0_8] : memref<1x128xf32, #tpu.memory_space<vmem>>, vector<1x128xf32>
    %9 = vector.broadcast %8 : vector<1x128xf32> to vector<48x128xf32>
    %10 = arith.addf %7, %9 : vector<48x128xf32>
    %cst_9 = arith.constant 0.000000e+00 : f32
    %11 = vector.broadcast %cst_9 : f32 to vector<48x128xf32>
    %12 = arith.maximumf %10, %11 : vector<48x128xf32>
    %13 = arith.truncf %12 : vector<48x128xf32> to vector<48x128xbf16>
    %c0_10 = arith.constant 0 : index
    %c0_11 = arith.constant 0 : index
    %14 = vector.load %arg5[%c0_10, %c0_11] : memref<128x128xbf16, #tpu.memory_space<vmem>>, vector<128x128xbf16>
    %cst_12 = arith.constant dense<0.000000e+00> : vector<48x128xf32>
    %15 = tpu.matmul %13, %14, %cst_12 {dimension_numbers = #tpu.dot_dimension_numbers<[1], [0], [0], [1], [0, 0, 1, 1], [], []>} : vector<48x128xbf16>, vector<128x128xbf16>, vector<48x128xf32> -> vector<48x128xf32>
    %c0_13 = arith.constant 0 : index
    %c0_14 = arith.constant 0 : index
    %16 = vector.load %arg6[%c0_13, %c0_14] : memref<1x128xf32, #tpu.memory_space<vmem>>, vector<1x128xf32>
    %17 = vector.broadcast %16 : vector<1x128xf32> to vector<48x128xf32>
    %18 = arith.addf %15, %17 : vector<48x128xf32>
    %c0_15 = arith.constant 0 : index
    %c0_16 = arith.constant 0 : index
    %19 = vector.load %arg7[%c0_15, %c0_16] : memref<48x128xf32, #tpu.memory_space<vmem>>, vector<48x128xf32>
    tpu.vector_store %arg7[%c0_15, %c0_16], %18 {strides = array<i32>} : memref<48x128xf32, #tpu.memory_space<vmem>>, vector<48x128xf32>,
    return
  }
  func.func @transform_0(%arg0: i32) -> (i32, i32) {
    %c0_i32 = arith.constant 0 : i32
    %c0_i32_0 = arith.constant 0 : i32
    return %arg0, %c0_i32 : i32, i32
  }
  func.func @transform_1(%arg0: i32) -> (i32, i32) {
    %c0_i32 = arith.constant 0 : i32
    %c0_i32_0 = arith.constant 0 : i32
    %c0_i32_1 = arith.constant 0 : i32
    return %c0_i32, %c0_i32_0 : i32, i32
  }
  func.func @transform_2(%arg0: i32) -> (i32, i32) {
    %c0_i32 = arith.constant 0 : i32
    %c0_i32_0 = arith.constant 0 : i32
    %c0_i32_1 = arith.constant 0 : i32
    return %c0_i32, %c0_i32_0 : i32, i32
  }
  func.func @transform_3(%arg0: i32) -> (i32, i32) {
    %c0_i32 = arith.constant 0 : i32
    %c0_i32_0 = arith.constant 0 : i32
    %c0_i32_1 = arith.constant 0 : i32
    return %c0_i32, %c0_i32_0 : i32, i32
  }
  func.func @transform_4(%arg0: i32) -> (i32, i32) {
    %c0_i32 = arith.constant 0 : i32
    %c0_i32_0 = arith.constant 0 : i32
    %c0_i32_1 = arith.constant 0 : i32
    return %c0_i32, %c0_i32_0 : i32, i32
  }
  func.func @transform_5(%arg0: i32) -> (i32, i32) {
    %c0_i32 = arith.constant 0 : i32
    %c0_i32_0 = arith.constant 0 : i32
    %c0_i32_1 = arith.constant 0 : i32
    return %c0_i32, %c0_i32_0 : i32, i32
  }
  func.func @transform_6(%arg0: i32) -> (i32, i32) {
    %c0_i32 = arith.constant 0 : i32
    %c0_i32_0 = arith.constant 0 : i32
    return %arg0, %c0_i32 : i32, i32
  }
}

</mosaic_0001>

<bundles_post_ra>
// kernel: tpu_custom_call.1
= control target key start
LH: loop header
LB: loop body
LE: loop exit
PB: predicated region body
PF: predicated region fallthrough
CT: control target
= control target key end

     0   :  { %11 = vsyncpa [#allocation3], 0  ;;  %s961_s0 = inlined_call_operand.hbm [shape: bf16[48,128], index: 0, kind: input, shape index: {}]   ;;  %s962_s1 = inlined_call_operand.hbm [shape: bf16[128,128], index: 1, kind: input, shape index: {}]   ;;  %s963_s2 = inlined_call_operand.hbm [shape: bf16[128,128], index: 2, kind: input, shape index: {}]   ;;  %s964_s3 = inlined_call_operand.vmem [shape: f32[1,128], index: 3, kind: input, shape index: {}]   ;;  %s965_s4 = inlined_call_operand.hbm [shape: bf16[128,128], index: 4, kind: input, shape index: {}]   ;;  %s966_s5 = inlined_call_operand.vmem [shape: f32[1,128], index: 5, kind: input, shape index: {}]   ;;  %s967_s6 = inlined_call_operand.hbm [shape: f32[48,128], index: 6, kind: output, shape index: {}]  }
   0x1   :  { %12 = vsyncpa [#allocation6], 0 }
   0x2   :  { %13 = vsyncpa [#allocation9], 0 }
   0x3   :  { %14 = vsyncpa [#allocation4], 0  ;;  %s832_s21 = smov [#allocation5]   ;;  %s833_s23 = smov [#allocation2]  }
   0x4   :  { %s32_s22 = sshll.u32 %s832_s21, 4  ;;  %s20_s24 = sshll.u32 %s833_s23, 4  ;;  %s33_s22 = int_to_ptr.vmem [resolvable:$true] %s32_s22  ;;  %s21_s24 = int_to_ptr.vmem [resolvable:$true] %s20_s24 }
   0x5   :  { %s732_s25 = scalar_lea.vmem %s33_s22, 1024  ;;  %p737_p1 = scmp.lt.s32.totalorder %s33_s22, %s33_s22 }
   0x6   :  { %p733_p0 = scmp.ne.s32.totalorder %s33_s22, %s732_s25  ;;  %p738_p2 = scmp.lt.s32.totalorder %s732_s25, %s732_s25 }
   0x8   :  { %p739_p3 = por %p738_p2, %p737_p1 }
   0xa   :  { %p740_p4 = pnand %p739_p3, %p733_p0 }
   0xc   :  { %743 = shalt.err (!%p740_p4)
}
   0xd   :  { %s834_s26 = smov 64   ;;  %s835_s27 = smov 4  }
   0xe   :  { %38 = dma.hbm_to_vmem [thread:$0]  %s962_s1, 1024, %s33_s22, [#allocation6], %s834_s26, %s834_s26, %s835_s27  }
   0xf   :  { %s752_s30 = scalar_lea.vmem %s21_s24, 384  ;;  %p757_p6 = scmp.lt.s32.totalorder %s21_s24, %s21_s24 }
  0x10   :  { %p753_p5 = scmp.ne.s32.totalorder %s21_s24, %s752_s30  ;;  %p758_p7 = scmp.lt.s32.totalorder %s752_s30, %s752_s30 }
  0x12   :  { %p759_p8 = por %p758_p7, %p757_p6 }
  0x14   :  { %p760_p9 = pnand %p759_p8, %p753_p5 }
  0x16   :  { %763 = shalt.err (!%p760_p9)
}
  0x17   :  { %26 = dma.hbm_to_vmem [thread:$0]  %s961_s0, 384, %s21_s24, [#allocation3], %s834_s26, %s834_s26, %s835_s27  }
  0x18   :  { %s836_s9 = smov [#allocation7]   ;;  %s837_s11 = smov [#allocation8]  }
  0x19   :  { %s44_s10 = sshll.u32 %s836_s9, 4  ;;  %s58_s12 = sshll.u32 %s837_s11, 4  ;;  %s45_s10 = int_to_ptr.vmem [resolvable:$true] %s44_s10  ;;  %s59_s12 = int_to_ptr.vmem [resolvable:$true] %s58_s12 }
  0x1a   :  { %s772_s1 = scalar_lea.vmem %s45_s10, 1024  ;;  %p777_p11 = scmp.lt.s32.totalorder %s45_s10, %s45_s10 }
  0x1b   :  { %p773_p10 = scmp.ne.s32.totalorder %s45_s10, %s772_s1  ;;  %p778_p12 = scmp.lt.s32.totalorder %s772_s1, %s772_s1 }
  0x1d   :  { %p779_p13 = por %p778_p12, %p777_p11 }
  0x1f   :  { %p780_p0 = pnand %p779_p13, %p773_p10 }
  0x21   :  { %783 = shalt.err (!%p780_p0)
}
  0x22   :  { %50 = dma.hbm_to_vmem [thread:$0]  %s963_s2, 1024, %s45_s10, [#allocation6], %s834_s26, %s834_s26, %s835_s27  }
  0x23   :  { %s792_s0 = scalar_lea.vmem %s59_s12, 1024  ;;  %p797_p2 = scmp.lt.s32.totalorder %s59_s12, %s59_s12 }
  0x24   :  { %p793_p1 = scmp.ne.s32.totalorder %s59_s12, %s792_s0  ;;  %p798_p3 = scmp.lt.s32.totalorder %s792_s0, %s792_s0 }
  0x26   :  { %p799_p4 = por %p798_p3, %p797_p2 }
  0x28   :  { %p800_p5 = pnand %p799_p4, %p793_p1 }
  0x2a   :  { %803 = shalt.err (!%p800_p5)
}
  0x2b   :  { %64 = dma.hbm_to_vmem [thread:$0]  %s965_s4, 1024, %s59_s12, [#allocation9], %s834_s26, %s834_s26, %s835_s27  }
  0x2c   :  { %824 = dma.done.wait [#allocation3], 384  }
  0x2d   :  { %825 = vsyncadd [#allocation3], 4294966912 }
  0x2e   :  { %826 = dma.done.wait [#allocation6], 2048  }
  0x2f   :  { %827 = vsyncadd [#allocation6], 4294965248 }
  0x30   :  { %828 = dma.done.wait [#allocation9], 1024  }
  0x31   :  { %829 = vsyncadd [#allocation9], 4294966272  ;;  %v838_v0 = vmov 0.0   ;;  %vm839_vm0 = vmmov 0   ;;  %v697_v1 = vld [vmem:[#allocation5 + $0x38] sm:$0xff]   ;;  %v698_v2 = vld [vmem:[#allocation5 + $0x30] sm:$0xff]  }
  0x32   :  { %586 = vmatprep.subr.bf16.mxu0 %v838_v0  ;;  %602 = vmatprep.mubr.msk.bf16.mxu0 %vm839_vm0, %v838_v0  ;;  %v699_v3 = vld [vmem:[#allocation5 + $0x28] sm:$0xff]   ;;  %v700_v4 = vld [vmem:[#allocation5 + $0x20] sm:$0xff]   ;;  %v708_v5 = vld [vmem:[#allocation7 + $0x38] sm:$0xff]   ;;  %s840_s18 = smov [#allocation10]  }
  0x33   :  { %614 = vmatprep.subr.bf16.mxu1 %v838_v0  ;;  %630 = vmatprep.mubr.msk.bf16.mxu1 %vm839_vm0, %v838_v0  ;;  %v709_v6 = vld [vmem:[#allocation7 + $0x30] sm:$0xff]   ;;  %v701_v7 = vld [vmem:[#allocation5 + $0x18] sm:$0xff]   ;;  %v710_v9 = vld [vmem:[#allocation7 + $0x28] sm:$0xff]  }
  0x34   :  { %587 = vmatpush3.bf16.msra.mxu0 %v697_v1  ;;  %615 = vmatpush3.bf16.msra.mxu1 %v708_v5  ;;  %v702_v8 = vld [vmem:[#allocation5 + $0x10] sm:$0xff]   ;;  %v711_v10 = vld [vmem:[#allocation7 + $0x20] sm:$0xff]   ;;  %v703_v11 = vld [vmem:[#allocation5 + $0x8] sm:$0xff]  }
  0x35   :  { %588 = vmatprep.subr.bf16.mxu0 %v838_v0  ;;  %616 = vmatprep.subr.bf16.mxu1 %v838_v0  ;;  %v712_v12 = vld [vmem:[#allocation7 + $0x18] sm:$0xff]   ;;  %v704_v13 = vld [vmem:[#allocation5] sm:$0xff]   ;;  %v705_v14 = vld [vmem:[#allocation2] sm:$0xff]  }
  0x36   :  { %v713_v15 = vld [vmem:[#allocation7 + $0x10] sm:$0xff]   ;;  %v707_v17 = vld [vmem:[#allocation2 + $0x10] sm:$0xff]   ;;  %v714_v18 = vld [vmem:[#allocation7 + $0x8] sm:$0xff]  }
  0x37   :  { %v706_v16 = vld [vmem:[#allocation2 + $0x8] sm:$0xff]   ;;  %v715_v19 = vld [vmem:[#allocation7] sm:$0xff]   ;;  %v716_v20 = vld [vmem:[#allocation8 + $0x38] sm:$0xff]  }
  0x38   :  { %589 = vmatpush3.bf16.msra.mxu0 %v698_v2  ;;  %617 = vmatpush3.bf16.msra.mxu1 %v709_v6  ;;  %v717_v21 = vld [vmem:[#allocation8 + $0x30] sm:$0xff]   ;;  %v718_v22 = vld [vmem:[#allocation8 + $0x28] sm:$0xff]   ;;  %v719_v23 = vld [vmem:[#allocation8 + $0x20] sm:$0xff]  }
  0x39   :  { %590 = vmatprep.subr.bf16.mxu0 %v838_v0  ;;  %618 = vmatprep.subr.bf16.mxu1 %v838_v0  ;;  %v720_v24 = vld [vmem:[#allocation8 + $0x18] sm:$0xff]   ;;  %v721_v46 = vld [vmem:[#allocation8 + $0x10] sm:$0xff]   ;;  %v722_v47 = vld [vmem:[#allocation8 + $0x8] sm:$0xff]  }
  0x3a   :  { %v723_v48 = vld [vmem:[#allocation8] sm:$0xff]   ;;  %v535_v49 = vld [vmem:[%s964_s3] ss:$0 sm:$0xff] }
  0x3c   :  { %591 = vmatpush3.bf16.msra.mxu0 %v699_v3  ;;  %619 = vmatpush3.bf16.msra.mxu1 %v710_v9 }
  0x3d   :  { %592 = vmatprep.subr.bf16.mxu0 %v838_v0  ;;  %620 = vmatprep.subr.bf16.mxu1 %v838_v0 }
  0x40   :  { %593 = vmatpush3.bf16.msra.mxu0 %v700_v4  ;;  %621 = vmatpush3.bf16.msra.mxu1 %v711_v10 }
  0x41   :  { %594 = vmatprep.subr.bf16.mxu0 %v838_v0  ;;  %622 = vmatprep.subr.bf16.mxu1 %v838_v0 }
  0x44   :  { %595 = vmatpush3.bf16.msra.mxu0 %v701_v7  ;;  %623 = vmatpush3.bf16.msra.mxu1 %v712_v12 }
  0x45   :  { %596 = vmatprep.subr.bf16.mxu0 %v838_v0  ;;  %624 = vmatprep.subr.bf16.mxu1 %v838_v0 }
  0x48   :  { %597 = vmatpush3.bf16.msra.mxu0 %v702_v8  ;;  %625 = vmatpush3.bf16.msra.mxu1 %v713_v15 }
  0x49   :  { %598 = vmatprep.subr.bf16.mxu0 %v838_v0  ;;  %626 = vmatprep.subr.bf16.mxu1 %v838_v0 }
  0x4c   :  { %599 = vmatpush3.bf16.msra.mxu0 %v703_v11  ;;  %627 = vmatpush3.bf16.msra.mxu1 %v714_v18 }
  0x4d   :  { %600 = vmatprep.subr.bf16.mxu0 %v838_v0  ;;  %628 = vmatprep.subr.bf16.mxu1 %v838_v0 }
  0x50   :  { %601 = vmatpush3.bf16.msra.mxu0 %v704_v13  ;;  %629 = vmatpush3.bf16.msra.mxu1 %v715_v19 }
  0x51   :  { %642 = vmatprep.subr.bf16.mxu0 %v838_v0  ;;  %670 = vmatprep.subr.bf16.mxu1 %v838_v0 }
  0x53   :  { %603 = vmatmul.mubr.bf16.vlgmr.msra.gmra.mxu0 %v705_v14  ;;  %v544_v14 = vld [vmem:[%s966_s5] ss:$0 sm:$0xff]  ;;  %s510_s5 = sshll.u32 %s840_s18, 4  ;;  %s511_s5 = int_to_ptr.vmem [resolvable:$true] %s510_s5 }
  0x54   :  { %606 = vmatprep.mubr.msk.bf16.mxu0 %vm839_vm0, %v838_v0  ;;  %643 = vmatpush3.bf16.msra.mxu0 %v716_v20  ;;  %s804_s19 = scalar_lea.vmem %s511_s5, 768  ;;  %p809_p7 = scmp.lt.s32.totalorder %s511_s5, %s511_s5 }
  0x55   :  { %644 = vmatprep.subr.bf16.mxu0 %v838_v0  ;;  %p805_p6 = scmp.ne.s32.totalorder %s511_s5, %s804_s19  ;;  %p810_p8 = scmp.lt.s32.totalorder %s804_s19, %s804_s19 }
  0x57   :  { %p811_p9 = por %p810_p8, %p809_p7 }
  0x58   :  { %645 = vmatpush3.bf16.msra.mxu0 %v717_v21 }
  0x59   :  { %646 = vmatprep.subr.bf16.mxu0 %v838_v0  ;;  %p812_p10 = pnand %p811_p9, %p805_p6 }
  0x5b   :  { %607 = vmatmul.mubr.bf16.gmra.mxu0 %v706_v16 }
  0x5c   :  { %610 = vmatprep.mubr.msk.bf16.mxu0 %vm839_vm0, %v838_v0  ;;  %647 = vmatpush3.bf16.msra.mxu0 %v718_v22 }
  0x5d   :  { %648 = vmatprep.subr.bf16.mxu0 %v838_v0 }
  0x60   :  { %649 = vmatpush3.bf16.msra.mxu0 %v719_v23 }
  0x61   :  { %650 = vmatprep.subr.bf16.mxu0 %v838_v0 }
  0x63   :  { %611 = vmatmul.mubr.bf16.gmra.mxu0 %v707_v17 }
  0x64   :  { %658 = vmatprep.mubr.msk.bf16.mxu0 %vm839_vm0, %v838_v0  ;;  %651 = vmatpush3.bf16.msra.mxu0 %v720_v24 }
  0x65   :  { %652 = vmatprep.subr.bf16.mxu0 %v838_v0 }
  0x68   :  { %653 = vmatpush3.bf16.msra.mxu0 %v721_v46 }
  0x69   :  { %654 = vmatprep.subr.bf16.mxu0 %v838_v0 }
  0x6c   :  { %655 = vmatpush3.bf16.msra.mxu0 %v722_v47 }
  0x6d   :  { %656 = vmatprep.subr.bf16.mxu0 %v838_v0 }
  0x70   :  { %657 = vmatpush3.bf16.msra.mxu0 %v723_v48 }
 0x113   :  { %v202_v25 = vpop.f32.mrf.mxu0 }
 0x114   :  { %v225_v28 = vmax.f32 %v202_v25, 0.0 }
 0x115   :  { %v604_v26 = vpop.f32.mrf.mxu0 }
 0x117   :  { %v205_v27 = vpop.f32.mrf.mxu0 }
 0x118   :  { %v226_v29 = vmax.f32 %v205_v27, 0.0 }
 0x119   :  { %v605_v30 = vpop.f32.mrf.mxu0 }
 0x11a   :  { %v231_v31 = vpack.c.bf16 %v226_v29, %v225_v28 }
 0x11b   :  { %v210_v32 = vpop.f32.mrf.mxu0 }
 0x11c   :  { %631 = vmatmul.mubr.bf16.vlgmr.msra.gmra.mxu1 %v231_v31  ;;  %v227_v35 = vmax.f32 %v210_v32, 0.0 }
 0x11d   :  { %v608_v33 = vpop.f32.mrf.mxu0  ;;  %634 = vmatprep.mubr.msk.bf16.mxu1 %vm839_vm0, %v838_v0  ;;  %678 = vmatpush3.bf16.msra.mxu1 %v716_v20 }
 0x11e   :  { %671 = vmatprep.subr.bf16.mxu1 %v838_v0 }
 0x11f   :  { %v213_v34 = vpop.f32.mrf.mxu0 }
 0x120   :  { %v228_v36 = vmax.f32 %v213_v34, 0.0 }
 0x121   :  { %v609_v37 = vpop.f32.mrf.mxu0  ;;  %679 = vmatpush3.bf16.msra.mxu1 %v717_v21 }
 0x122   :  { %v232_v38 = vpack.c.bf16 %v228_v36, %v227_v35  ;;  %672 = vmatprep.subr.bf16.mxu1 %v838_v0 }
 0x123   :  { %v218_v39 = vpop.f32.mrf.mxu0 }
 0x124   :  { %635 = vmatmul.mubr.bf16.gmra.mxu1 %v232_v38  ;;  %v229_v42 = vmax.f32 %v218_v39, 0.0 }
 0x125   :  { %v612_v40 = vpop.f32.mrf.mxu0  ;;  %638 = vmatprep.mubr.msk.bf16.mxu1 %vm839_vm0, %v838_v0  ;;  %680 = vmatpush3.bf16.msra.mxu1 %v718_v22 }
 0x126   :  { %673 = vmatprep.subr.bf16.mxu1 %v838_v0 }
 0x127   :  { %v221_v41 = vpop.f32.mrf.mxu0 }
 0x128   :  { %v230_v43 = vmax.f32 %v221_v41, 0.0 }
 0x129   :  { %v613_v44 = vpop.f32.mrf.mxu0  ;;  %681 = vmatpush3.bf16.msra.mxu1 %v719_v23 }
 0x12a   :  { %v233_v45 = vpack.c.bf16 %v230_v43, %v229_v42  ;;  %674 = vmatprep.subr.bf16.mxu1 %v838_v0 }
 0x12c   :  { %639 = vmatmul.mubr.bf16.gmra.mxu1 %v233_v45 }
 0x12d   :  { %682 = vmatpush3.bf16.msra.mxu1 %v720_v24  ;;  %662 = vmatprep.mubr.msk.bf16.mxu1 %vm839_vm0, %v838_v0 }
 0x12e   :  { %675 = vmatprep.subr.bf16.mxu1 %v838_v0 }
 0x131   :  { %683 = vmatpush3.bf16.msra.mxu1 %v721_v46 }
 0x132   :  { %676 = vmatprep.subr.bf16.mxu1 %v838_v0 }
 0x135   :  { %684 = vmatpush3.bf16.msra.mxu1 %v722_v47 }
 0x136   :  { %677 = vmatprep.subr.bf16.mxu1 %v838_v0 }
 0x139   :  { %685 = vmatpush3.bf16.msra.mxu1 %v723_v48 }
 0x1dc   :  { %v339_v50 = vpop.f32.mrf.mxu1 }
 0x1dd   :  { %v340_v52 = vadd.f32 %v535_v49, %v339_v50 }
 0x1de   :  { %v632_v51 = vpop.f32.mrf.mxu1 }
 0x1df   :  { %v362_v56 = vmax.f32 %v340_v52, 0.0 }
 0x1e0   :  { %v342_v53 = vpop.f32.mrf.mxu1 }
 0x1e1   :  { %v343_v54 = vadd.f32 %v535_v49, %v342_v53 }
 0x1e2   :  { %v633_v55 = vpop.f32.mrf.mxu1 }
 0x1e3   :  { %v363_v57 = vmax.f32 %v343_v54, 0.0 }
 0x1e4   :  { %v347_v58 = vpop.f32.mrf.mxu1 }
 0x1e5   :  { %v368_v59 = vpack.c.bf16 %v363_v57, %v362_v56  ;;  %v348_v61 = vadd.f32 %v535_v49, %v347_v58 }
 0x1e6   :  { %v636_v60 = vpop.f32.mrf.mxu1 }
 0x1e7   :  { %659 = vmatmul.mubr.bf16.vlgmr.msra.gmra.mxu0 %v368_v59  ;;  %v364_v2 = vmax.f32 %v348_v61, 0.0 }
 0x1e8   :  { %v350_v62 = vpop.f32.mrf.mxu1 }
 0x1e9   :  { %v351_v63 = vadd.f32 %v535_v49, %v350_v62 }
 0x1ea   :  { %v637_v1 = vpop.f32.mrf.mxu1 }
 0x1eb   :  { %v365_v3 = vmax.f32 %v351_v63, 0.0 }
 0x1ec   :  { %v355_v4 = vpop.f32.mrf.mxu1 }
 0x1ed   :  { %v369_v5 = vpack.c.bf16 %v365_v3, %v364_v2  ;;  %v356_v7 = vadd.f32 %v535_v49, %v355_v4 }
 0x1ee   :  { %v640_v6 = vpop.f32.mrf.mxu1 }
 0x1ef   :  { %663 = vmatmul.mubr.bf16.vlgmr.msra.gmra.mxu1 %v369_v5  ;;  %v366_v11 = vmax.f32 %v356_v7, 0.0 }
 0x1f0   :  { %v358_v8 = vpop.f32.mrf.mxu1  ;;  %666 = vmatprep.mubr.msk.bf16.mxu1 %vm839_vm0, %v838_v0 }
 0x1f1   :  { %v359_v9 = vadd.f32 %v535_v49, %v358_v8 }
 0x1f2   :  { %v641_v10 = vpop.f32.mrf.mxu1 }
 0x1f3   :  { %v367_v12 = vmax.f32 %v359_v9, 0.0 }
 0x1f5   :  { %v370_v13 = vpack.c.bf16 %v367_v12, %v366_v11 }
 0x1f7   :  { %667 = vmatmul.mubr.bf16.gmra.mxu1 %v370_v13 }
 0x2a7   :  { %v476_v15 = vpop.f32.mrf.mxu0 }
 0x2a8   :  { %v477_v16 = vadd.f32 %v544_v14, %v476_v15 }
 0x2a9   :  { %v660_v17 = vpop.f32.mrf.mxu0 }
 0x2aa   :  { %499 = vst [vmem:[#allocation10] sm:$0xff] %v477_v16 }
 0x2ab   :  { %v479_v18 = vpop.f32.mrf.mxu0 }
 0x2ac   :  { %v480_v19 = vadd.f32 %v544_v14, %v479_v18 }
 0x2ad   :  { %v661_v20 = vpop.f32.mrf.mxu0 }
 0x2ae   :  { %500 = vst [vmem:[#allocation10 + $0x8] sm:$0xff] %v480_v19 }
 0x2af   :  { %v484_v21 = vpop.f32.mrf.mxu1 }
 0x2b0   :  { %v485_v0 = vadd.f32 %v544_v14, %v484_v21 }
 0x2b1   :  { %v664_v22 = vpop.f32.mrf.mxu1 }
 0x2b2   :  { %501 = vst [vmem:[#allocation10 + $0x10] sm:$0xff] %v485_v0 }
 0x2b3   :  { %v487_v23 = vpop.f32.mrf.mxu1 }
 0x2b4   :  { %v488_v24 = vadd.f32 %v544_v14, %v487_v23 }
 0x2b5   :  { %v665_v25 = vpop.f32.mrf.mxu1 }
 0x2b6   :  { %502 = vst [vmem:[#allocation10 + $0x18] sm:$0xff] %v488_v24 }
 0x2b7   :  { %v492_v26 = vpop.f32.mrf.mxu1 }
 0x2b8   :  { %v493_v27 = vadd.f32 %v544_v14, %v492_v26 }
 0x2b9   :  { %v668_v28 = vpop.f32.mrf.mxu1 }
 0x2ba   :  { %503 = vst [vmem:[#allocation10 + $0x20] sm:$0xff] %v493_v27 }
 0x2bb   :  { %v495_v29 = vpop.f32.mrf.mxu1 }
 0x2bc   :  { %v496_v30 = vadd.f32 %v544_v14, %v495_v29 }
 0x2bd   :  { %v669_v31 = vpop.f32.mrf.mxu1 }
 0x2be   :  { %504 = vst [vmem:[#allocation10 + $0x28] sm:$0xff] %v496_v30 }
 0x2bf   :  { %815 = shalt.err (!%p812_p10)
}
 0x2c0   :  { %s841_s20 = smov 128   ;;  %s842_s21 = smov 8  }
 0x2c1   :  { %516 = dma.vmem_to_hbm [thread:$0]  %s511_s5, 768, %s967_s6, [#allocation4], %s841_s20, %s841_s20, %s842_s21  }
 0x2c2   :  { %830 = dma.done.wait [#allocation4], 768  }
 0x2c3   :  { %831 = vsyncadd [#allocation4], 4294966528 }
 0x2c4   :  { %520 = vsyncpa [#allocation3], 1 }
 0x2c5   :  { %521 = vsyncpa [#allocation6], 1 }
 0x2c6   :  { %522 = vsyncpa [#allocation9], 1 }
 0x2c7   :  { %523 = vsyncpa [#allocation4], 1 }

</bundles_post_ra>
